<compile_context>
chip_gen: v7x
topology: tpu7x:2x2x1
jax: 0.10.0
libtpu: 0.0.40
codegen_flags: <defaults>
</compile_context>

<pallas_src>
import functools

import jax
import jax.numpy as jnp
from jax.experimental import pallas as pl
from jax.experimental.pallas import tpu as pltpu


def _set_embedding_kernel(x_ref, seqlen_ref, w_ref, b_ref, out_ref, acc_ref, *, mode):
    k = pl.program_id(0)

    @pl.when(k == 0)
    def _():
        acc_ref[...] = jnp.zeros_like(acc_ref)

    # Steady-state: pure elementwise / sublane-reduce work, hidden behind the DMA.
    x = x_ref[...].astype(jnp.float32)            # [B, TILE_N, D]
    acc_ref[...] += jnp.sum(x, axis=1)            # partial set-sum -> [B, D]

    # Epilogue: normalize, apply the Linear layer, store once.
    @pl.when(k == pl.num_programs(0) - 1)
    def _():
        pooled = acc_ref[...]                     # [B, D] f32
        if mode == "mean":
            pooled = pooled / seqlen_ref[...].astype(jnp.float32)  # [B, 1] broadcast
        out = jnp.dot(
            pooled,
            w_ref[...].astype(jnp.float32),       # pre-transposed weight [D_in, D_out]
            preferred_element_type=jnp.float32,
            precision=jax.lax.Precision.HIGHEST,
        )
        out = out + b_ref[...].astype(jnp.float32)  # bias [1, D] broadcasts over B
        out_ref[...] = out.astype(out_ref.dtype)


def set_embedding(x, seq_len, weight, bias, *, mode="mean", tile_n=512):
    """Pallas implementation of SetEmbedding.forward.

    x: [B, N, D], seq_len: [B], weight: [D, D] (torch Linear layout [out, in]),
    bias: [D].  Returns [B, D].
    """
    assert mode in ("mean", "sum")
    b_sz, n, d = x.shape

    # Tile of the set axis: multiple of 8 sublanes, capped at (rounded-up) N.
    tile_n = max(8, min(tile_n, ((n + 7) // 8) * 8))
    n_pad = (-n) % tile_n
    if n_pad:
        # Zero rows do not change the sum (the PyTorch module sums the full N
        # axis without masking, so this is exact).
        x = jnp.pad(x, ((0, 0), (0, n_pad), (0, 0)))
    n_tiles = (n + n_pad) // tile_n

    w_t = weight.T.astype(x.dtype)                       # [D_in, D_out]
    b2 = bias.reshape(1, d).astype(jnp.float32)          # [1, D]
    seq_len_f = seq_len.astype(jnp.float32).reshape(b_sz, 1)

    kernel = functools.partial(_set_embedding_kernel, mode=mode)

    out = pl.pallas_call(
        kernel,
        out_shape=jax.ShapeDtypeStruct((b_sz, d), x.dtype),
        grid=(n_tiles,),
        in_specs=[
            pl.BlockSpec((b_sz, tile_n, d), lambda k: (0, k, 0)),  # x, tiled over N
            pl.BlockSpec((b_sz, 1), lambda k: (0, 0)),             # seq_len
            pl.BlockSpec((d, d), lambda k: (0, 0)),                # W^T (resident)
            pl.BlockSpec((1, d), lambda k: (0, 0)),                # bias (resident)
        ],
        out_specs=pl.BlockSpec((b_sz, d), lambda k: (0, 0)),
        scratch_shapes=[pltpu.VMEM((b_sz, d), jnp.float32)],       # pooled accumulator
        compiler_params=pltpu.CompilerParams(
            dimension_semantics=("arbitrary",),                     # reduction axis
        ),
    )(x, seq_len_f, w_t, b2)
    return out


def _reference(x, seq_len, weight, bias, *, mode):
    pooled = x.astype(jnp.float32).sum(axis=1)
    if mode == "mean":
        pooled = pooled / seq_len.astype(jnp.float32)[:, None]
    return (
        jnp.dot(pooled, weight.T.astype(jnp.float32),
                precision=jax.lax.Precision.HIGHEST)
        + bias.astype(jnp.float32)
    )


if __name__ == "__main__":
    key = jax.random.PRNGKey(0)
    k1, k2, k3 = jax.random.split(key, 3)

    B, N, D = 2, 8, 32  # batch, set size (seq), channels

    x = jax.random.normal(k1, (B, N, D), dtype=jnp.float32)
    seq_len = jnp.array([8.0, 5.0], dtype=jnp.float32)
    weight = jax.random.normal(k2, (D, D), dtype=jnp.float32) * 0.1  # [out, in]
    bias = jax.random.normal(k3, (D,), dtype=jnp.float32) * 0.1

    ok = True
    for mode in ("mean", "sum"):
        got = set_embedding(x, seq_len, weight, bias, mode=mode)
        got = jax.block_until_ready(got)
        want = _reference(x, seq_len, weight, bias, mode=mode)
        if not jnp.allclose(got, want, rtol=1e-4, atol=1e-4):
            ok = False
            err = jnp.max(jnp.abs(got - want))
            print(f"MISMATCH ({mode}): max abs err {err}")

    if ok:
        print("KERNEL_OK")
</pallas_src>

<mosaic_0001>
module attributes {stable_mosaic.version = 11 : i64} {
  func.func @_set_embedding_kernel(%arg0: i32, %arg1: memref<2x8x32xf32, #tpu.memory_space<vmem>>, %arg2: memref<2x1xf32, #tpu.memory_space<vmem>>, %arg3: memref<32x32xf32, #tpu.memory_space<vmem>>, %arg4: memref<1x32xf32, #tpu.memory_space<vmem>>, %arg5: memref<2x32xf32, #tpu.memory_space<vmem>>, %arg6: memref<2x32xf32, #tpu.memory_space<vmem>>) attributes {dimension_semantics = [#tpu.dimension_semantics<arbitrary>], iteration_bounds = array<i64: 1>, scalar_prefetch = 0 : i64, scratch_operands = 1 : i64, tpu.core_type = #tpu.core_type<tc>, window_params = [{transform_indices = @transform_0, window_bounds = array<i64: 2, 8, 32>}, {pipeline_mode = #tpu.pipeline_mode<synchronous>, transform_indices = @transform_1, window_bounds = array<i64: 2, 1>}, {pipeline_mode = #tpu.pipeline_mode<synchronous>, transform_indices = @transform_2, window_bounds = array<i64: 32, 32>}, {pipeline_mode = #tpu.pipeline_mode<synchronous>, transform_indices = @transform_3, window_bounds = array<i64: 1, 32>}, {pipeline_mode = #tpu.pipeline_mode<synchronous>, transform_indices = @transform_4, window_bounds = array<i64: 2, 32>}]} {
    %c0_i32 = arith.constant 0 : i32
    %0 = arith.cmpi eq, %arg0, %c0_i32 : i32
    %1 = arith.extui %0 : i1 to i32
    %c0_i32_0 = arith.constant 0 : i32
    %2 = arith.cmpi ne, %1, %c0_i32_0 : i32
    scf.if %2 {
      %cst_9 = arith.constant 0.000000e+00 : f32
      %11 = vector.broadcast %cst_9 : f32 to vector<2x32xf32>
      %c0_10 = arith.constant 0 : index
      %c0_11 = arith.constant 0 : index
      %12 = vector.load %arg6[%c0_10, %c0_11] : memref<2x32xf32, #tpu.memory_space<vmem>>, vector<2x32xf32>
      tpu.vector_store %arg6[%c0_10, %c0_11], %11 {strides = array<i32>} : memref<2x32xf32, #tpu.memory_space<vmem>>, vector<2x32xf32>,
    } else {
    }
    %c0 = arith.constant 0 : index
    %c0_1 = arith.constant 0 : index
    %c0_2 = arith.constant 0 : index
    %3 = vector.load %arg1[%c0, %c0_1, %c0_2] : memref<2x8x32xf32, #tpu.memory_space<vmem>>, vector<2x8x32xf32>
    %c0_3 = arith.constant 0 : index
    %c0_4 = arith.constant 0 : index
    %4 = vector.load %arg6[%c0_3, %c0_4] : memref<2x32xf32, #tpu.memory_space<vmem>>, vector<2x32xf32>
    %cst = arith.constant dense<0.000000e+00> : vector<2x32xf32>
    %5 = vector.multi_reduction <add>, %3, %cst [1] : vector<2x8x32xf32> to vector<2x32xf32>
    %6 = arith.addf %4, %5 : vector<2x32xf32>
    %c0_5 = arith.constant 0 : index
    %c0_6 = arith.constant 0 : index
    %7 = vector.load %arg6[%c0_5, %c0_6] : memref<2x32xf32, #tpu.memory_space<vmem>>, vector<2x32xf32>
    tpu.vector_store %arg6[%c0_5, %c0_6], %6 {strides = array<i32>} : memref<2x32xf32, #tpu.memory_space<vmem>>, vector<2x32xf32>,
    %c0_i32_7 = arith.constant 0 : i32
    %8 = arith.cmpi eq, %arg0, %c0_i32_7 : i32
    %9 = arith.extui %8 : i1 to i32
    %c0_i32_8 = arith.constant 0 : i32
    %10 = arith.cmpi ne, %9, %c0_i32_8 : i32
    scf.if %10 {
      %c0_9 = arith.constant 0 : index
      %c0_10 = arith.constant 0 : index
      %11 = vector.load %arg6[%c0_9, %c0_10] : memref<2x32xf32, #tpu.memory_space<vmem>>, vector<2x32xf32>
      %c0_11 = arith.constant 0 : index
      %c0_12 = arith.constant 0 : index
      %12 = vector.load %arg2[%c0_11, %c0_12] : memref<2x1xf32, #tpu.memory_space<vmem>>, vector<2x1xf32>
      %13 = vector.broadcast %12 : vector<2x1xf32> to vector<2x32xf32>
      %14 = arith.divf %11, %13 : vector<2x32xf32>
      %c0_13 = arith.constant 0 : index
      %c0_14 = arith.constant 0 : index
      %15 = vector.load %arg3[%c0_13, %c0_14] : memref<32x32xf32, #tpu.memory_space<vmem>>, vector<32x32xf32>
      %cst_15 = arith.constant dense<0.000000e+00> : vector<2x32xf32>
      %16 = tpu.matmul %14, %15, %cst_15 {dimension_numbers = #tpu.dot_dimension_numbers<[1], [0], [0], [1], [0, 0, 1, 1], [], []>, precision = #tpu.contract_precision<fp32>} : vector<2x32xf32>, vector<32x32xf32>, vector<2x32xf32> -> vector<2x32xf32>
      %c0_16 = arith.constant 0 : index
      %c0_17 = arith.constant 0 : index
      %17 = vector.load %arg4[%c0_16, %c0_17] : memref<1x32xf32, #tpu.memory_space<vmem>>, vector<1x32xf32>
      %18 = vector.broadcast %17 : vector<1x32xf32> to vector<2x32xf32>
      %19 = arith.addf %16, %18 : vector<2x32xf32>
      %c0_18 = arith.constant 0 : index
      %c0_19 = arith.constant 0 : index
      %20 = vector.load %arg5[%c0_18, %c0_19] : memref<2x32xf32, #tpu.memory_space<vmem>>, vector<2x32xf32>
      tpu.vector_store %arg5[%c0_18, %c0_19], %19 {strides = array<i32>} : memref<2x32xf32, #tpu.memory_space<vmem>>, vector<2x32xf32>,
    } else {
    }
    return
  }
  func.func @transform_0(%arg0: i32) -> (i32, i32, i32) {
    %c0_i32 = arith.constant 0 : i32
    %c0_i32_0 = arith.constant 0 : i32
    %c0_i32_1 = arith.constant 0 : i32
    return %c0_i32, %arg0, %c0_i32_0 : i32, i32, i32
  }
  func.func @transform_1(%arg0: i32) -> (i32, i32) {
    %c0_i32 = arith.constant 0 : i32
    %c0_i32_0 = arith.constant 0 : i32
    %c0_i32_1 = arith.constant 0 : i32
    return %c0_i32, %c0_i32_0 : i32, i32
  }
  func.func @transform_2(%arg0: i32) -> (i32, i32) {
    %c0_i32 = arith.constant 0 : i32
    %c0_i32_0 = arith.constant 0 : i32
    %c0_i32_1 = arith.constant 0 : i32
    return %c0_i32, %c0_i32_0 : i32, i32
  }
  func.func @transform_3(%arg0: i32) -> (i32, i32) {
    %c0_i32 = arith.constant 0 : i32
    %c0_i32_0 = arith.constant 0 : i32
    %c0_i32_1 = arith.constant 0 : i32
    return %c0_i32, %c0_i32_0 : i32, i32
  }
  func.func @transform_4(%arg0: i32) -> (i32, i32) {
    %c0_i32 = arith.constant 0 : i32
    %c0_i32_0 = arith.constant 0 : i32
    %c0_i32_1 = arith.constant 0 : i32
    return %c0_i32, %c0_i32_0 : i32, i32
  }
}

</mosaic_0001>

<bundles_post_ra>
// kernel: tpu_custom_call.1
= control target key start
LH: loop header
LB: loop body
LE: loop exit
PB: predicated region body
PF: predicated region fallthrough
CT: control target
= control target key end

     0   :  { %9 = vsyncpa [#allocation4], 0  ;;  %s955_s0 = inlined_call_operand.hbm [shape: f32[2,8,32], index: 0, kind: input, shape index: {}]   ;;  %s956_s1 = inlined_call_operand.vmem [shape: f32[2,1], index: 1, kind: input, shape index: {}]   ;;  %s957_s2 = inlined_call_operand.hbm [shape: f32[32,32], index: 2, kind: input, shape index: {}]   ;;  %s958_s3 = inlined_call_operand.vmem [shape: f32[1,32], index: 3, kind: input, shape index: {}]   ;;  %s959_s4 = inlined_call_operand.hbm [shape: f32[2,32], index: 4, kind: output, shape index: {}]  }
   0x1   :  { %10 = vsyncpa [#allocation7], 0 }
   0x2   :  { %11 = vsyncpa [#allocation5], 0  ;;  %s833_s15 = smov [#allocation3]   ;;  %s761_s19 = scalar_lea.hbm %s955_s0, 256 }
   0x3   :  { %s17_s16 = sshll.u32 %s833_s15, 4  ;;  %p762_p0 = scmp.ne.s32.totalorder %s955_s0, %s761_s19  ;;  %s18_s16 = int_to_ptr.vmem [resolvable:$true] %s17_s16 }
   0x4   :  { %p765_p1 = scmp.lt.u32.totalorder %s761_s19, %s955_s0 }
   0x6   :  { %p767_p2 = pnand %p765_p1, %p762_p0 }
   0x8   :  { %770 = shalt.err (!%p767_p2)
}
   0x9   :  { %s771_s24 = scalar_lea.vmem %s18_s16, 256  ;;  %p776_p4 = scmp.lt.s32.totalorder %s18_s16, %s18_s16 }
   0xa   :  { %p772_p3 = scmp.ne.s32.totalorder %s18_s16, %s771_s24  ;;  %p777_p5 = scmp.lt.s32.totalorder %s771_s24, %s771_s24 }
   0xc   :  { %p778_p6 = por %p777_p5, %p776_p4 }
   0xe   :  { %p779_p7 = pnand %p778_p6, %p772_p3 }
  0x10   :  { %782 = shalt.err (!%p779_p7)
}
  0x11   :  { %s834_s25 = smov 128   ;;  %s835_s26 = smov 8  }
  0x12   :  { %23 = dma.hbm_to_vmem [thread:$0]  %s955_s0, 256, %s18_s16, [#allocation4], %s834_s25, %s834_s25, %s835_s26  }
  0x13   :  { %s836_s29 = smov [#allocation6]   ;;  %s783_s7 = scalar_lea.hbm %s957_s2, 512 }
  0x14   :  { %s31_s30 = sshll.u32 %s836_s29, 4  ;;  %p784_p8 = scmp.ne.s32.totalorder %s957_s2, %s783_s7  ;;  %s32_s30 = int_to_ptr.vmem [resolvable:$true] %s31_s30 }
  0x15   :  { %p787_p9 = scmp.lt.u32.totalorder %s783_s7, %s957_s2 }
  0x17   :  { %p789_p10 = pnand %p787_p9, %p784_p8 }
  0x19   :  { %792 = shalt.err (!%p789_p10)
}
  0x1a   :  { %s793_s12 = scalar_lea.vmem %s32_s30, 512  ;;  %p798_p12 = scmp.lt.s32.totalorder %s32_s30, %s32_s30 }
  0x1b   :  { %p794_p11 = scmp.ne.s32.totalorder %s32_s30, %s793_s12  ;;  %p799_p13 = scmp.lt.s32.totalorder %s793_s12, %s793_s12 }
  0x1d   :  { %p800_p0 = por %p799_p13, %p798_p12 }
  0x1f   :  { %p801_p1 = pnand %p800_p0, %p794_p11 }
  0x21   :  { %804 = shalt.err (!%p801_p1)
}
  0x22   :  { %37 = dma.hbm_to_vmem [thread:$0]  %s957_s2, 512, %s32_s30, [#allocation7], %s834_s25, %s834_s25, %s835_s26  }
  0x23   :  { %827 = dma.done.wait [#allocation4], 256  }
  0x24   :  { %828 = vsyncadd [#allocation4], 4294967040 }
  0x25   :  { %829 = dma.done.wait [#allocation7], 512  }
  0x26   :  { %830 = vsyncadd [#allocation7], 4294966784  ;;  %vm50_vm0 = vcmask 254976   ;;  %v837_v0 = vmov 0   ;;  %v838_v1 = vmov 0.0   ;;  %vm55_vm1 = vcmask 261120  }
  0x27   :  { %758 = vset.pattern.permute.xlu0 %v837_v0  ;;  %51 = vst.msk [vmem:[#allocation2] sm:$0x3] %vm50_vm0, %v838_v1  ;;  %v82_v2 = vld [vmem:[%s956_s1] sm:$0x3]  ;;  %v52_v3 = vld [vmem:[#allocation3] sm:$0xff]  ;;  %v53_v4 = vld [vmem:[#allocation3 + $0x8] sm:$0xff] }
  0x28   :  { %85 = vperm.xlu0 %758, %v82_v2   ;;  %v56_v5 = vsel %vm55_vm1, %v52_v3, 0.0  ;;  %v63_v6 = vsel %vm55_vm1, %v53_v4, 0.0  ;;  %v90_v15 = vld [vmem:[#allocation6] sm:$0xff]  ;;  %v91_v16 = vld [vmem:[#allocation6 + $0x8] sm:$0xff]  ;;  %vm72_vm2 = vcmask 1041409   ;;  %v92_v25 = vld [vmem:[#allocation6 + $0x10] sm:$0xff] }
  0x29   :  { %v57_v7 = vrot.slane %v56_v5, 4  ;;  %v64_v8 = vrot.slane %v63_v6, 4  ;;  %v105_v19 = vand.u32 4294901760, %v90_v15  ;;  %v108_v20 = vand.u32 4294901760, %v91_v16  ;;  %v93_v26 = vld [vmem:[#allocation6 + $0x18] sm:$0xff]  ;;  %s841_s16 = smov [#allocation8]  }
  0x2a   :  { %v839_v27 = vmov 0.0|0.0   ;;  %v111_v30 = vand.u32 4294901760, %v92_v25  ;;  %v114_v31 = vand.u32 4294901760, %v93_v26  ;;  %vm840_vm3 = vmmov 0   ;;  %v606_v4 = vld [vmem:[%s958_s3] ss:$0 sm:$0xff] }
  0x2b   :  { %v58_v9 = vadd.f32 %v57_v7, %v56_v5  ;;  %v65_v10 = vadd.f32 %v64_v8, %v63_v6  ;;  %v898_v24 = vpack.c.bf16 %v108_v20, %v105_v19  ;;  %721 = vmatprep.subr.bf16.mxu0 %v839_v27  ;;  %v901_v28 = vsub.f32 %v90_v15, %v105_v19  ;;  %s596_s17 = sshll.u32 %s841_s16, 4  ;;  %s597_s17 = int_to_ptr.vmem [resolvable:$true] %s596_s17 }
  0x2c   :  { %v903_v29 = vsub.f32 %v91_v16, %v108_v20  ;;  %703 = vmatprep.subr.bf16.mxu1 %v839_v27  ;;  %v707_v34 = vpack.c.bf16 %v114_v31, %v111_v30  ;;  %v199_v35 = vsub.f32 %v92_v25, %v111_v30  ;;  %v206_v36 = vsub.f32 %v93_v26, %v114_v31  ;;  %s805_s18 = scalar_lea.vmem %s597_s17, 32  ;;  %p810_p3 = scmp.lt.s32.totalorder %s597_s17, %s597_s17 }
  0x2d   :  { %v59_v11 = vrot.slane %v58_v9, 2  ;;  %v66_v12 = vrot.slane %v65_v10, 2  ;;  %723 = vmatpush3.bf16.msra.mxu0 %v898_v24  ;;  %705 = vmatpush3.bf16.msra.mxu1 %v898_v24  ;;  %v186_v37 = vand.u32 4294901760, %v901_v28  ;;  %p806_p2 = scmp.ne.s32.totalorder %s597_s17, %s805_s18  ;;  %p811_p4 = scmp.lt.s32.totalorder %s805_s18, %s805_s18 }
  0x2e   :  { %v54_v21 = vld [vmem:[#allocation2] sm:$0x3]  ;;  %724 = vmatprep.subr.bf16.mxu0 %v839_v27  ;;  %706 = vmatprep.subr.bf16.mxu1 %v839_v27  ;;  %v193_v38 = vand.u32 4294901760, %v903_v29  ;;  %v200_v44 = vand.u32 4294901760, %v199_v35  ;;  %v207_v45 = vand.u32 4294901760, %v206_v36  ;;  %v716_v53 = vpack.c.bf16 %v903_v29, %v901_v28 }
  0x2f   :  { %v60_v13 = vadd.f32 %v59_v11, %v58_v9  ;;  %v67_v14 = vadd.f32 %v66_v12, %v65_v10  ;;  %678 = vmatprep.mubr.msk.f32.mxu0 %vm840_vm3, %v838_v1  ;;  %645 = vmatprep.mubr.msk.f32.mxu1 %vm840_vm3, %v838_v1  ;;  %v187_v40 = vsub.f32 %v901_v28, %v186_v37  ;;  %p812_p5 = por %p811_p4, %p810_p3 }
  0x30   :  { %v728_v39 = vpack.c.bf16 %v193_v38, %v186_v37  ;;  %v194_v41 = vsub.f32 %v903_v29, %v193_v38  ;;  %v731_v47 = vpack.c.bf16 %v207_v45, %v200_v44  ;;  %v201_v48 = vsub.f32 %v199_v35, %v200_v44 }
  0x31   :  { %v61_v17 = vrot.slane %v60_v13, 1  ;;  %v68_v18 = vrot.slane %v67_v14, 1  ;;  %726 = vmatpush3.bf16.msra.mxu0 %v707_v34  ;;  %708 = vmatpush3.bf16.msra.mxu1 %v707_v34  ;;  %v188_v42 = vand.u32 4294901760, %v187_v40  ;;  %v208_v49 = vsub.f32 %v206_v36, %v207_v45  ;;  %p813_p6 = pnand %p812_p5, %p806_p2 }
  0x32   :  { %727 = vmatprep.subr.bf16.mxu0 %v839_v27  ;;  %709 = vmatprep.subr.bf16.mxu1 %v839_v27  ;;  %v195_v43 = vand.u32 4294901760, %v194_v41  ;;  %v202_v50 = vand.u32 4294901760, %v201_v48  ;;  %v719_v54 = vpack.c.bf16 %v206_v36, %v199_v35 }
  0x33   :  { %v62_v22 = vadd.f32 %v61_v17, %v60_v13  ;;  %v69_v23 = vadd.f32 %v68_v18, %v67_v14  ;;  %v209_v51 = vand.u32 4294901760, %v208_v49 }
  0x34   :  { %v710_v46 = vpack.c.bf16 %v195_v43, %v188_v42 }
  0x35   :  { %v73_v32 = vsel %vm72_vm2, %v69_v23, %v62_v22  ;;  %v713_v52 = vpack.c.bf16 %v209_v51, %v202_v50 }
  0x36   :  { %v75_v33 = vadd.f32 %v73_v32, %v54_v21 }
  0x38   :  { %77 = vst.msk [vmem:[#allocation2] sm:$0x3] %vm50_vm0, %v75_v33 }
  0x3f   :  { %v81_v56 = vld [vmem:[#allocation2] sm:$0x3] }
  0xa7   :  { %v86_v55 = vpop.permute.xlu0 %85 }
  0xa8   :  { %759 = vrcp.f32 %v86_v55 }
  0xb2   :  { %v760_v57 = vpop.eup %759 }
  0xb3   :  { %v89_v58 = vmul.f32 %v760_v57, %v81_v56 }
  0xb5   :  { %v102_v59 = vsel %vm55_vm1, %v89_v58, 0 }
  0xb6   :  { %v173_v60 = vand.u32 4294901760, %v102_v59 }
  0xb8   :  { %v174_v61 = vsub.f32 %v102_v59, %v173_v60 }
  0xba   :  { %v175_v62 = vand.u32 4294901760, %v174_v61 }
  0xbc   :  { %679 = vmatmul.mubr.f32.vlgmr.msra.gmra.mrb[0].mxu0 %v175_v62  ;;  %v176_v63 = vsub.f32 %v174_v61, %v175_v62 }
  0xbd   :  { %729 = vmatpush3.bf16.msra.mxu0 %v728_v39  ;;  %689 = vmatprep.mubr.msk.f32.mxu0 %vm840_vm3, %v838_v1 }
  0xbe   :  { %v177_v0 = vand.u32 4294901760, %v176_v63  ;;  %730 = vmatprep.subr.bf16.mxu0 %v839_v27 }
  0xc0   :  { %646 = vmatmul.mubr.f32.vlgmr.msra.gmra.mrb[0].mxu1 %v177_v0 }
  0xc1   :  { %711 = vmatpush3.bf16.msra.mxu1 %v710_v46  ;;  %732 = vmatpush3.bf16.msra.mxu0 %v731_v47 }
  0xc2   :  { %712 = vmatprep.subr.bf16.mxu1 %v839_v27  ;;  %733 = vmatprep.subr.bf16.mxu0 %v839_v27 }
  0xc3   :  { %656 = vmatprep.mubr.msk.f32.mxu1 %vm840_vm3, %v838_v1 }
  0xc4   :  { %690 = vmatmul.mubr.f32.vlgmr.msra.gmra.mrb[0].mxu0 %v173_v60 }
  0xc5   :  { %714 = vmatpush3.bf16.msra.mxu1 %v713_v52  ;;  %735 = vmatpush3.bf16.msra.mxu0 %v898_v24 }
  0xc6   :  { %715 = vmatprep.subr.bf16.mxu1 %v839_v27  ;;  %736 = vmatprep.subr.bf16.mxu0 %v839_v27 }
  0xc7   :  { %700 = vmatprep.mubr.msk.f32.mxu0 %vm840_vm3, %v838_v1 }
  0xc8   :  { %657 = vmatmul.mubr.f32.vlgmr.msra.gmra.mrb[0].mxu1 %v173_v60 }
  0xc9   :  { %717 = vmatpush3.bf16.msra.mxu1 %v716_v53  ;;  %738 = vmatpush3.bf16.msra.mxu0 %v707_v34 }
  0xca   :  { %718 = vmatprep.subr.bf16.mxu1 %v839_v27  ;;  %667 = vmatprep.mubr.msk.f32.mxu1 %vm840_vm3, %v838_v1 }
  0xcc   :  { %701 = vmatmul.mubr.f32.vlgmr.msra.gmra.mrb[0].mxu0 %v173_v60 }
  0xcd   :  { %720 = vmatpush3.bf16.msra.mxu1 %v719_v54 }
  0xd0   :  { %668 = vmatmul.mubr.f32.vlgmr.msra.gmra.mrb[0].mxu1 %v174_v61 }
 0x19f   :  { %v585_v2 = vpop.f32.mrb[0].mxu0 }
 0x1a0   :  { %v702_v3 = vpop.f32.mrb[1].mxu0 }
 0x1a3   :  { %v350_v5 = vpop.f32.mrb[0].mxu1 }
 0x1a4   :  { %v739_v6 = vadd.f32 %v606_v4, %v350_v5  ;;  %v669_v7 = vpop.f32.mrb[1].mxu1 }
 0x1a6   :  { %v740_v8 = vadd.f32 %v739_v6, %v585_v2 }
 0x1a8   :  { %589 = vst.msk [vmem:[#allocation8] sm:$0x3] %vm50_vm0, %v740_v8 }
 0x1a9   :  { %816 = shalt.err (!%p813_p6)
}
 0x1aa   :  { %s817_s3 = scalar_lea.hbm %s959_s4, 32 }
 0x1ab   :  { %p818_p7 = scmp.ne.s32.totalorder %s959_s4, %s817_s3  ;;  %p821_p8 = scmp.lt.u32.totalorder %s817_s3, %s959_s4 }
 0x1ad   :  { %p823_p9 = pnand %p821_p8, %p818_p7 }
 0x1af   :  { %826 = shalt.err (!%p823_p9)
}
 0x1b0   :  { %599 = dma.vmem_to_hbm [thread:$0]  %s597_s17, 32, %s959_s4, [#allocation5]  }
 0x1b1   :  { %831 = dma.done.wait [#allocation5], 32  }
 0x1b2   :  { %832 = vsyncadd [#allocation5], 4294967264 }
 0x1b3   :  { %603 = vsyncpa [#allocation4], 1 }
 0x1b4   :  { %604 = vsyncpa [#allocation7], 1 }
 0x1b5   :  { %605 = vsyncpa [#allocation5], 1 }

</bundles_post_ra>
